<compile_context>
chip_gen: v7x
topology: tpu7x:2x2x1
jax: 0.10.0
libtpu: 0.0.40
codegen_flags: <defaults>
</compile_context>

<pallas_src>
import functools

import jax
import jax.numpy as jnp
from jax import lax
from jax.experimental import pallas as pl
from jax.experimental.pallas import tpu as pltpu


def _round_up(n, m):
    return (n + m - 1) // m * m


def _quanv_kernel(patches_ref, table_ref, out_ref, *, threshold, n_states):
    # patches_ref: (k*k, Npad)    VMEM  -- im2col'd channel-0 pixels, lane-dense
    # table_ref:   (OC, n_states) VMEM  -- per-channel circuit response table
    # out_ref:     (OC, Npad)     VMEM  -- lane-dense output slab
    p = patches_ref[...]                                     # (kk, Npad) f32
    kk, npad = p.shape

    # Thresholded bit pattern of every patch.  Qubit i == row i == row-major
    # flat position dx*k + dy inside the patch (matches torch.reshape in
    # QuanvCircuit.run).  One compare over the whole lane-dense slab.
    bits = (p > threshold).astype(jnp.int32)                 # (kk, Npad)
    bitpos = lax.broadcasted_iota(jnp.int32, (kk, npad), 0)  # row i -> i
    weights = jnp.left_shift(1, bitpos)                      # row i -> 2**i
    idx = jnp.sum(bits * weights, axis=0, keepdims=True)     # (1, Npad)

    # Table gather as a one-hot matmul on the MXU:
    #   out[c, n] = sum_e table[c, e] * (idx[n] == e) = table[c, idx[n]]
    states = lax.broadcasted_iota(jnp.int32, (n_states, npad), 0)
    onehot = (states == idx).astype(jnp.float32)             # (n_states, Npad)
    out_ref[...] = jnp.dot(table_ref[...], onehot,
                           preferred_element_type=jnp.float32)


def quanv_forward(x, table, kernel_size, threshold=127.0):
    B, C, H, W = x.shape
    OC, n_states = table.shape
    k = kernel_size
    assert n_states == 2 ** (k * k)
    lx = H - k + 1
    ly = W - k + 1
    n = B * lx * ly
    npad = _round_up(n, 128)

    # im2col (pure layout plumbing): row i = flat patch position dx*k + dy,
    # column = b*lx*ly + ox*ly + oy.  Pad columns to a multiple of 128 so the
    # kernel works on full, unmasked vregs.  Pad value 0 maps to state 0 and is
    # sliced away below.
    x0 = x[:, 0].astype(jnp.float32)                         # (B, H, W)
    planes = [x0[:, dx:dx + lx, dy:dy + ly].reshape(n)
              for dx in range(k) for dy in range(k)]
    patches = jnp.stack(planes, axis=0)                      # (k*k, n)
    patches = jnp.pad(patches, ((0, 0), (0, npad - n)))      # (k*k, npad)

    kernel = functools.partial(
        _quanv_kernel, threshold=threshold, n_states=n_states)

    out_flat = pl.pallas_call(
        kernel,
        out_shape=jax.ShapeDtypeStruct((OC, npad), jnp.float32),
        in_specs=[
            pl.BlockSpec(memory_space=pltpu.MemorySpace.VMEM),
            pl.BlockSpec(memory_space=pltpu.MemorySpace.VMEM),
        ],
        out_specs=pl.BlockSpec(memory_space=pltpu.MemorySpace.VMEM),
    )(patches, table.astype(jnp.float32))

    # Back to the module's (B, OC, lx, ly) layout.
    out = out_flat[:, :n].reshape(OC, B, lx, ly)
    return jnp.transpose(out, (1, 0, 2, 3))


def quanv_reference(x, table, kernel_size, threshold=127.0):
    """Pure-JAX reference of the same deterministic semantics."""
    B, C, H, W = x.shape
    lx = H - kernel_size + 1
    ly = W - kernel_size + 1
    x0 = x[:, 0]
    idx = jnp.zeros((B, lx, ly), dtype=jnp.int32)
    for dx in range(kernel_size):
        for dy in range(kernel_size):
            bit = (x0[:, dx:dx + lx, dy:dy + ly] > threshold).astype(jnp.int32)
            idx = idx + bit * (1 << (dx * kernel_size + dy))
    out = jnp.take(table, idx, axis=1)            # (OC, B, lx, ly)
    return jnp.transpose(out, (1, 0, 2, 3)).astype(jnp.float32)


if __name__ == "__main__":
    # Module config: Quanv(in_channels=1, out_channels=4, kernel_size=2, shots=100)
    in_channels, out_channels, kernel_size = 1, 4, 2
    shots = 100
    n_qubits = kernel_size * kernel_size
    threshold = 127.0

    key = jax.random.PRNGKey(0)
    kx, kt = jax.random.split(key)

    # MNIST-like pixel intensities in [0, 255], NCHW.
    x = jax.random.uniform(kx, (2, in_channels, 16, 16),
                           minval=0.0, maxval=255.0, dtype=jnp.float32)

    # Deterministic synthetic circuit-response table: mean probability of
    # measuring '1' across qubits, quantized to multiples of 1/(shots*n_qubits)
    # just like the shot-counted estimate in the original code.
    u = jax.random.uniform(kt, (out_channels, 2 ** n_qubits), dtype=jnp.float32)
    table = jnp.round(u * (shots * n_qubits)) / (shots * n_qubits)

    out = quanv_forward(x, table, kernel_size, threshold)
    out = jax.block_until_ready(out)

    ref = quanv_reference(x, table, kernel_size, threshold)
    assert out.shape == (2, out_channels, 15, 15), out.shape
    assert out.dtype == jnp.float32
    assert jnp.allclose(out, ref), "Pallas kernel mismatch vs reference"

    print("KERNEL_OK")
</pallas_src>

<mosaic_0001>
module attributes {stable_mosaic.version = 11 : i64} {
  func.func @_quanv_kernel(%arg0: memref<4x512xf32, #tpu.memory_space<vmem>>, %arg1: memref<4x16xf32, #tpu.memory_space<vmem>>, %arg2: memref<4x512xf32, #tpu.memory_space<vmem>>) attributes {dimension_semantics = [], scalar_prefetch = 0 : i64, scratch_operands = 0 : i64, tpu.core_type = #tpu.core_type<tc>} {
    %c0 = arith.constant 0 : index
    %c0_0 = arith.constant 0 : index
    %0 = vector.load %arg0[%c0, %c0_0] : memref<4x512xf32, #tpu.memory_space<vmem>>, vector<4x512xf32>
    %cst = arith.constant 1.270000e+02 : f32
    %1 = vector.broadcast %cst : f32 to vector<4x512xf32>
    %2 = arith.cmpf ogt, %0, %1 : vector<4x512xf32>
    %3 = arith.extui %2 : vector<4x512xi1> to vector<4x512xi32>
    %4 = tpu.iota {dimensions = array<i32: 0>} : vector<4x512xi32>
    %c1_i32 = arith.constant 1 : i32
    %5 = vector.broadcast %c1_i32 : i32 to vector<4x512xi32>
    %6 = arith.shli %5, %4 : vector<4x512xi32>
    %7 = arith.muli %3, %6 : vector<4x512xi32>
    %cst_1 = arith.constant dense<0> : vector<512xi32>
    %8 = vector.multi_reduction <add>, %7, %cst_1 [0] : vector<4x512xi32> to vector<512xi32>
    %9 = vector.shape_cast %8 : vector<512xi32> to vector<1x512xi32>
    %10 = tpu.iota {dimensions = array<i32: 0>} : vector<16x512xi32>
    %11 = vector.broadcast %9 : vector<1x512xi32> to vector<16x512xi32>
    %12 = arith.cmpi eq, %10, %11 : vector<16x512xi32>
    %13 = arith.extui %12 : vector<16x512xi1> to vector<16x512xi32>
    %14 = arith.sitofp %13 : vector<16x512xi32> to vector<16x512xf32>
    %c0_2 = arith.constant 0 : index
    %c0_3 = arith.constant 0 : index
    %15 = vector.load %arg1[%c0_2, %c0_3] : memref<4x16xf32, #tpu.memory_space<vmem>>, vector<4x16xf32>
    %cst_4 = arith.constant dense<0.000000e+00> : vector<4x512xf32>
    %16 = tpu.matmul %15, %14, %cst_4 {dimension_numbers = #tpu.dot_dimension_numbers<[1], [0], [0], [1], [0, 0, 1, 1], [], []>} : vector<4x16xf32>, vector<16x512xf32>, vector<4x512xf32> -> vector<4x512xf32>
    %c0_5 = arith.constant 0 : index
    %c0_6 = arith.constant 0 : index
    %17 = vector.load %arg2[%c0_5, %c0_6] : memref<4x512xf32, #tpu.memory_space<vmem>>, vector<4x512xf32>
    tpu.vector_store %arg2[%c0_5, %c0_6], %16 {strides = array<i32>} : memref<4x512xf32, #tpu.memory_space<vmem>>, vector<4x512xf32>,
    return
  }
}

</mosaic_0001>

<bundles_post_ra>
// kernel: tpu_custom_call.1
= control target key start
LH: loop header
LB: loop body
LE: loop exit
PB: predicated region body
PF: predicated region fallthrough
CT: control target
= control target key end

     0   :  { %7 = vsyncpa [#allocation3], 0  ;;  %s457_s0 = inlined_call_operand.hbm [shape: f32[4,512], index: 0, kind: input, shape index: {}]   ;;  %s458_s1 = inlined_call_operand.hbm [shape: f32[4,16], index: 1, kind: input, shape index: {}]   ;;  %s459_s2 = inlined_call_operand.hbm [shape: f32[4,512], index: 2, kind: output, shape index: {}]  }
   0x1   :  { %8 = vsyncpa [#allocation6], 0 }
   0x2   :  { %9 = vsyncpa [#allocation4], 0  ;;  %s389_s9 = smov [#allocation2]   ;;  %s390_s11 = smov [#allocation5]  }
   0x3   :  { %s16_s10 = sshll.u32 %s389_s9, 4  ;;  %s26_s12 = sshll.u32 %s390_s11, 4  ;;  %s17_s10 = int_to_ptr.vmem [resolvable:$true] %s16_s10  ;;  %s27_s12 = int_to_ptr.vmem [resolvable:$true] %s26_s12 }
   0x4   :  { %s317_s15 = scalar_lea.hbm %s457_s0, 256 }
   0x5   :  { %p318_p0 = scmp.ne.s32.totalorder %s457_s0, %s317_s15  ;;  %p321_p1 = scmp.lt.u32.totalorder %s317_s15, %s457_s0 }
   0x7   :  { %p323_p2 = pnand %p321_p1, %p318_p0 }
   0x9   :  { %326 = shalt.err (!%p323_p2)
}
   0xa   :  { %s327_s20 = scalar_lea.vmem %s17_s10, 256  ;;  %p332_p4 = scmp.lt.s32.totalorder %s17_s10, %s17_s10 }
   0xb   :  { %p328_p3 = scmp.ne.s32.totalorder %s17_s10, %s327_s20  ;;  %p333_p5 = scmp.lt.s32.totalorder %s327_s20, %s327_s20 }
   0xd   :  { %p334_p6 = por %p333_p5, %p332_p4 }
   0xf   :  { %p335_p7 = pnand %p334_p6, %p328_p3 }
  0x11   :  { %338 = shalt.err (!%p335_p7)
}
  0x12   :  { %19 = dma.hbm_to_vmem [thread:$0]  %s457_s0, 256, %s17_s10, [#allocation3]  }
  0x13   :  { %s339_s25 = scalar_lea.hbm %s458_s1, 64 }
  0x14   :  { %p340_p8 = scmp.ne.s32.totalorder %s458_s1, %s339_s25  ;;  %p343_p9 = scmp.lt.u32.totalorder %s339_s25, %s458_s1 }
  0x16   :  { %p345_p10 = pnand %p343_p9, %p340_p8 }
  0x18   :  { %348 = shalt.err (!%p345_p10)
}
  0x19   :  { %s349_s30 = scalar_lea.vmem %s27_s12, 64  ;;  %p354_p12 = scmp.lt.s32.totalorder %s27_s12, %s27_s12 }
  0x1a   :  { %p350_p11 = scmp.ne.s32.totalorder %s27_s12, %s349_s30  ;;  %p355_p13 = scmp.lt.s32.totalorder %s349_s30, %s349_s30 }
  0x1c   :  { %p356_p0 = por %p355_p13, %p354_p12 }
  0x1e   :  { %p357_p1 = pnand %p356_p0, %p350_p11 }
  0x20   :  { %360 = shalt.err (!%p357_p1)
}
  0x21   :  { %29 = dma.hbm_to_vmem [thread:$0]  %s458_s1, 64, %s27_s12, [#allocation6]  }
  0x22   :  { %383 = dma.done.wait [#allocation3], 256  }
  0x23   :  { %384 = vsyncadd [#allocation3], 4294967040 }
  0x24   :  { %385 = dma.done.wait [#allocation6], 64  }
  0x25   :  { %386 = vsyncadd [#allocation6], 4294967232  ;;  %v42_v0 = vlaneseq  ;;  %v391_v1 = vmov 839922192   ;;  %v392_v4 = vmov 0.0   ;;  %v393_v6 = vmov 1  }
  0x26   :  { %v46_v2 = vunpack.c.l.s4 %v391_v1  ;;  %179 = vmatprep.mubr.f32.mxu0 %v392_v4  ;;  %250 = vmatprep.mubr.f32.mxu1 %v392_v4  ;;  %v36_v9 = vld [vmem:[#allocation2] sm:$0xff]  ;;  %v37_v11 = vld [vmem:[#allocation2 + $0x8] sm:$0xff]  ;;  %v394_v12 = vmov 0   ;;  %vm56_vm2 = vcmask 1043456   ;;  %v395_v48 = vmov 1.0|1.0  }
  0x27   :  { %v436_v3 = vshrl.u32 %v42_v0, 7  ;;  %vm38_vm0 = vcmp.gt.f32.partialorder %v36_v9, 127.0  ;;  %vm39_vm1 = vcmp.gt.f32.partialorder %v37_v11, 127.0  ;;  %v110_v49 = vld [vmem:[#allocation5] sm:$0xf]  ;;  %vm111_vm15 = vcmask 130048  }
  0x28   :  { %v47_v5 = vunpack.c.0.s8 %v46_v2  ;;  %v40_v13 = vsel %vm38_vm0, 1, %v394_v12  ;;  %v41_v14 = vsel %vm39_vm1, 1, %v394_v12  ;;  %s396_s1 = smov [#allocation7]  }
  0x29   :  { %v44_v7 = vshll.u32 %v393_v6, %v436_v3  ;;  %v85_v37 = vadd.s32 8, %v436_v3  ;;  %s273_s4 = sshll.u32 %s396_s1, 4  ;;  %s274_s4 = int_to_ptr.vmem [resolvable:$true] %s273_s4 }
  0x2a   :  { %v50_v8 = vsub.s32 %v47_v5, %v436_v3  ;;  %s361_s5 = scalar_lea.vmem %s274_s4, 256  ;;  %p366_p3 = scmp.lt.s32.totalorder %s274_s4, %s274_s4 }
  0x2b   :  { %p362_p2 = scmp.ne.s32.totalorder %s274_s4, %s361_s5  ;;  %p367_p4 = scmp.lt.s32.totalorder %s361_s5, %s361_s5 }
  0x2c   :  { %v51_v10 = vrot.slane %v44_v7, %v50_v8 }
  0x2d   :  { %p368_p5 = por %p367_p4, %p366_p3 }
  0x2e   :  { %v52_v15 = vmul.u32 %v51_v10, %v40_v13  ;;  %v53_v16 = vmul.u32 %v51_v10, %v41_v14 }
  0x2f   :  { %p369_p6 = pnand %p368_p5, %p362_p2 }
  0x30   :  { %v54_v17 = vcombine.high %v52_v15, %v52_v15  ;;  %v55_v18 = vcombine.high %v53_v16, %v53_v16  ;;  %v57_v19 = vsel %vm56_vm2, %v52_v15, 0  ;;  %v71_v20 = vsel %vm56_vm2, %v53_v16, 0 }
  0x31   :  { %v58_v21 = vrot.slane %v57_v19, 4  ;;  %v72_v22 = vrot.slane %v71_v20, 4 }
  0x32   :  { %v64_v23 = vsel %vm56_vm2, %v54_v17, 0  ;;  %v78_v24 = vsel %vm56_vm2, %v55_v18, 0 }
  0x33   :  { %v65_v25 = vrot.slane %v64_v23, 4  ;;  %v79_v26 = vrot.slane %v78_v24, 4  ;;  %v59_v27 = vadd.s32 %v58_v21, %v57_v19  ;;  %v73_v28 = vadd.s32 %v72_v22, %v71_v20 }
  0x35   :  { %v66_v29 = vadd.s32 %v65_v25, %v64_v23  ;;  %v80_v30 = vadd.s32 %v79_v26, %v78_v24  ;;  %v60_v31 = vrot.slane %v59_v27, 2  ;;  %v74_v32 = vrot.slane %v73_v28, 2 }
  0x37   :  { %v67_v33 = vrot.slane %v66_v29, 2  ;;  %v81_v34 = vrot.slane %v80_v30, 2  ;;  %v61_v35 = vadd.s32 %v60_v31, %v59_v27  ;;  %v75_v36 = vadd.s32 %v74_v32, %v73_v28 }
  0x39   :  { %v68_v38 = vadd.s32 %v67_v33, %v66_v29  ;;  %v82_v39 = vadd.s32 %v81_v34, %v80_v30  ;;  %v62_v40 = vrot.slane %v61_v35, 1  ;;  %v76_v41 = vrot.slane %v75_v36, 1 }
  0x3b   :  { %v69_v42 = vrot.slane %v68_v38, 1  ;;  %v83_v43 = vrot.slane %v82_v39, 1  ;;  %v63_v44 = vadd.s32 %v62_v40, %v61_v35  ;;  %v77_v45 = vadd.s32 %v76_v41, %v75_v36 }
  0x3d   :  { %v70_v46 = vadd.s32 %v69_v42, %v68_v38  ;;  %v84_v47 = vadd.s32 %v83_v43, %v82_v39  ;;  %vm86_vm3 = vcmp.eq.s32.totalorder %v436_v3, %v63_v44  ;;  %vm90_vm4 = vcmp.eq.s32.totalorder %v85_v37, %v63_v44 }
  0x3e   :  { %vm303_vm5 = vmpackc.low %vm90_vm4, %vm86_vm3  ;;  %vm88_vm6 = vcmp.eq.s32.totalorder %v436_v3, %v77_v45  ;;  %vm92_vm7 = vcmp.eq.s32.totalorder %v85_v37, %v77_v45 }
  0x3f   :  { %vm87_vm8 = vcmp.eq.s32.totalorder %v436_v3, %v70_v46  ;;  %vm91_vm9 = vcmp.eq.s32.totalorder %v85_v37, %v70_v46  ;;  %vm89_vm10 = vcmp.eq.s32.totalorder %v436_v3, %v84_v47  ;;  %vm93_vm11 = vcmp.eq.s32.totalorder %v85_v37, %v84_v47  ;;  %vm307_vm12 = vmpackc.low %vm92_vm7, %vm88_vm6 }
  0x40   :  { %vm301_vm13 = vmpackc.low %vm91_vm9, %vm87_vm8 }
  0x41   :  { %302 = vmatprep.subr.msk.bf16.mxu0 %vm301_vm13, %v395_v48  ;;  %vm305_vm14 = vmpackc.low %vm93_vm11, %vm89_vm10 }
  0x42   :  { %306 = vmatprep.subr.msk.bf16.mxu1 %vm305_vm14, %v395_v48  ;;  %304 = vmatpush1.bf16.msk.msra.mxu0 %vm303_vm5, %v395_v48 }
  0x43   :  { %308 = vmatpush1.bf16.msk.msra.mxu1 %vm307_vm12, %v395_v48 }
  0x45   :  { %295 = vmatmul.mubr.msk.f32.vlgmr.msra.gmra.mrb[0].mxu0 %vm111_vm15, %v110_v49 }
  0x46   :  { %300 = vmatmul.mubr.msk.f32.vlgmr.msra.gmra.mrb[0].mxu1 %vm111_vm15, %v110_v49 }
 0x118   :  { %v181_v50 = vpop.f32.mrb[0].mxu0 }
 0x119   :  { %v252_v51 = vpop.f32.mrb[0].mxu1  ;;  %v183_v52 = vpop.f32.mrb[1].mxu0 }
 0x11a   :  { %v261_v53 = vcombine.low %v181_v50, %v183_v52  ;;  %v254_v54 = vpop.f32.mrb[1].mxu1 }
 0x11b   :  { %v262_v55 = vcombine.low %v252_v51, %v254_v54 }
 0x11c   :  { %265 = vst [vmem:[#allocation7] sm:$0xff] %v261_v53 }
 0x11d   :  { %266 = vst [vmem:[#allocation7 + $0x8] sm:$0xff] %v262_v55 }
 0x11e   :  { %372 = shalt.err (!%p369_p6)
}
 0x11f   :  { %s373_s8 = scalar_lea.hbm %s459_s2, 256 }
 0x120   :  { %p374_p7 = scmp.ne.s32.totalorder %s459_s2, %s373_s8  ;;  %p377_p8 = scmp.lt.u32.totalorder %s373_s8, %s459_s2 }
 0x122   :  { %p379_p9 = pnand %p377_p8, %p374_p7 }
 0x124   :  { %382 = shalt.err (!%p379_p9)
}
 0x125   :  { %276 = dma.vmem_to_hbm [thread:$0]  %s274_s4, 256, %s459_s2, [#allocation4]  }
 0x126   :  { %387 = dma.done.wait [#allocation4], 256  }
 0x127   :  { %388 = vsyncadd [#allocation4], 4294967040 }
 0x128   :  { %280 = vsyncpa [#allocation3], 1 }
 0x129   :  { %281 = vsyncpa [#allocation6], 1 }
 0x12a   :  { %282 = vsyncpa [#allocation4], 1 }

</bundles_post_ra>
